<compile_context>
chip_gen: v6e
topology: v6e:2x2x1
jax: 0.10.0
libtpu: 0.0.40
codegen_flags: <defaults>
</compile_context>

<pallas_src>
import functools

import jax
import jax.numpy as jnp
from jax import lax
from jax.experimental import pallas as pl
from jax.experimental.pallas import tpu as pltpu


# ----------------------------- fused Pallas kernel ---------------------------

def _fused_mha_kernel(scale_ref, x_ref, wqkv_ref, wout_ref, cos_ref, sin_ref,
                      o_ref, attn_scratch, *, n_heads, d_head):
    """One grid step == one batch element; all heads handled in-register."""
    D = n_heads * d_head
    half = d_head // 2

    x = x_ref[0]                                      # (S, D)   bf16
    wqkv = wqkv_ref[...].astype(jnp.bfloat16)         # (3D, D)  ternary {-1,0,1}, exact in bf16
    wout = wout_ref[...].astype(jnp.bfloat16)         # (D, D)
    cos = cos_ref[...].astype(jnp.float32)            # (S, dh)
    sin_s = sin_ref[...].astype(jnp.float32)          # (S, dh)  sign-folded: [-sin, +sin]
    s_q = scale_ref[0]      # gamma_qkv^2 * d_head^-0.5   (folded into q)
    s_o = scale_ref[1]      # gamma_qkv * gamma_out       (folded into out-proj epilogue)

    # qkv projection: y = x @ Wqkv.T  (bf16 MXU operands, f32 accumulation; the
    # in-features contraction uses W in its stored nn.Linear layout).
    qkv = lax.dot_general(x, wqkv, (((1,), (1,)), ((), ())),
                          preferred_element_type=jnp.float32)    # (S, 3D) f32

    q = qkv[:, :D] * s_q          # gammas + softmax scale folded into q only
    k = qkv[:, D:2 * D]           # raw ternary-matmul outputs (scale-free)
    v = qkv[:, 2 * D:]

    # RoPE rotate-half without any MXU work:
    #   rotate_half(t) * sin == concat([t2, t1]) * [-sin, +sin]
    def rope(t):                                       # t: (S, dh) f32
        rolled = jnp.concatenate([t[:, half:], t[:, :half]], axis=-1)
        return t * cos + rolled * sin_s

    # Per-head scaled-dot-product attention, statically unrolled.  Head outputs
    # are written lane-dense into attn_scratch (no concatenate).
    # TODO(synk): attention mask is not wired in (mask=None path only); dropout
    #             assumed p=0 / eval mode.
    for h in range(n_heads):
        lo = h * d_head
        qh = rope(q[:, lo:lo + d_head]).astype(jnp.bfloat16)     # (S, dh)
        kh = rope(k[:, lo:lo + d_head]).astype(jnp.bfloat16)
        vh = v[:, lo:lo + d_head].astype(jnp.bfloat16)

        # scores = qh @ kh.T without materializing the transpose.
        s = lax.dot_general(qh, kh, (((1,), (1,)), ((), ())),
                            preferred_element_type=jnp.float32)  # (S, S) f32
        m = jnp.max(s, axis=-1, keepdims=True)
        p = jnp.exp(s - m)
        denom = jnp.sum(p, axis=-1, keepdims=True)
        attn = (p * pl.reciprocal(denom, approx=True)).astype(jnp.bfloat16)
        head_out = jnp.dot(attn, vh, preferred_element_type=jnp.float32)
        attn_scratch[:, lo:lo + d_head] = head_out               # (S, dh) f32

    out = lax.dot_general(attn_scratch[...].astype(jnp.bfloat16), wout,
                          (((1,), (1,)), ((), ())),
                          preferred_element_type=jnp.float32) * s_o
    o_ref[0] = out.astype(o_ref.dtype)


# --------------------------- host-side preparation ---------------------------

def quantize_bitlinear_weight(w, eps=1e-5):
    """BitNet-b1.58 forward-path weight quantization (hoisted out of the forward).

    gamma = mean(|W|);  W_q = clip(round(W / (gamma + eps)), -1, 1) in {-1,0,1}.
    Effective weight is gamma * W_q; gamma is applied in-kernel as a scalar.
    """
    # TODO(synk): reference BitLinear may also quantize activations / apply a
    #             norm; only the ternary weight path is modeled here.
    gamma = jnp.mean(jnp.abs(w)).astype(jnp.float32)
    w_q = jnp.clip(jnp.round(w / (gamma + eps)), -1.0, 1.0).astype(jnp.int8)
    return w_q, gamma


def rope_tables(max_seq_len, d_head, base=10000.0):
    """Standard rotate-half RoPE tables, per-head shape (S, d_head)."""
    pos = jnp.arange(max_seq_len, dtype=jnp.float32)[:, None]               # (S, 1)
    inv_freq = 1.0 / (base ** (jnp.arange(0, d_head, 2, dtype=jnp.float32) / d_head))
    freqs = pos * inv_freq[None, :]                                         # (S, dh/2)
    emb = jnp.concatenate([freqs, freqs], axis=-1)                          # (S, dh)
    return jnp.cos(emb), jnp.sin(emb)


def prepare_mha_params(w_qkv, w_out, *, n_heads, d_head, max_seq_len=2048):
    """Done once per weight update -- NOT in the per-token forward path."""
    wqkv_q, g_qkv = quantize_bitlinear_weight(w_qkv)
    wout_q, g_out = quantize_bitlinear_weight(w_out)
    scale = d_head ** -0.5
    # Two folded scalars consumed by the kernel (SMEM):
    #   [0] gamma_qkv^2 * scale  -> multiplies q (covers q-gamma, k-gamma, 1/sqrt(dh))
    #   [1] gamma_qkv * gamma_out -> multiplies the out-projection result (covers v-gamma)
    kernel_scales = jnp.stack([g_qkv * g_qkv * scale, g_qkv * g_out]).astype(jnp.float32)
    cos, sin = rope_tables(max_seq_len, d_head)
    half = d_head // 2
    sin_signed = jnp.concatenate([-sin[:, :half], sin[:, half:]], axis=-1)  # sign-folded
    return dict(
        wqkv_q=wqkv_q, wout_q=wout_q,
        gammas=jnp.stack([g_qkv, g_out]),            # raw gammas (reference only)
        kernel_scales=kernel_scales,
        cos_k=cos.astype(jnp.bfloat16),              # (S, dh) bf16 kernel tables
        sin_k=sin_signed.astype(jnp.bfloat16),
        cos_f32=cos, sin_f32=sin)                    # f32 tables for the reference


# --------------------------------- forward -----------------------------------

def multi_head_attention(x, params, *, n_heads, d_head, use_rope=True):
    B, S, D = x.shape
    assert D == n_heads * d_head and d_head % 2 == 0
    out_dtype = x.dtype

    if use_rope:
        cos = params["cos_k"][:S]
        sin = params["sin_k"][:S]
    else:
        cos = jnp.ones((S, d_head), jnp.bfloat16)
        sin = jnp.zeros((S, d_head), jnp.bfloat16)

    # bf16 activations into the kernel: halves x DMA, MXU consumes bf16 directly.
    x_bf16 = x.astype(jnp.bfloat16)

    kernel = functools.partial(_fused_mha_kernel, n_heads=n_heads, d_head=d_head)

    return pl.pallas_call(
        kernel,
        out_shape=jax.ShapeDtypeStruct((B, S, D), out_dtype),
        grid=(B,),
        in_specs=[
            pl.BlockSpec(memory_space=pltpu.MemorySpace.SMEM),   # folded scalars (2,)
            pl.BlockSpec((1, S, D), lambda b: (b, 0, 0)),        # x (bf16)
            pl.BlockSpec((3 * D, D), lambda b: (0, 0)),          # Wqkv ternary int8
            pl.BlockSpec((D, D), lambda b: (0, 0)),              # Wout ternary int8
            pl.BlockSpec((S, d_head), lambda b: (0, 0)),         # cos (bf16, per-head)
            pl.BlockSpec((S, d_head), lambda b: (0, 0)),         # sin sign-folded (bf16)
        ],
        out_specs=pl.BlockSpec((1, S, D), lambda b: (b, 0, 0)),
        scratch_shapes=[pltpu.VMEM((S, D), jnp.float32)],        # lane-dense head outputs
        compiler_params=pltpu.CompilerParams(
            dimension_semantics=("parallel",),   # batch axis shards across TCs on v7x
            vmem_limit_bytes=64 * 1024 * 1024),
    )(params["kernel_scales"], x_bf16, params["wqkv_q"], params["wout_q"], cos, sin)


# ------------------------------ pure-JAX reference ---------------------------

def reference_forward(x, params, *, n_heads, d_head, use_rope=True):
    """f32 HIGHEST-precision reference mirroring the PyTorch module semantics."""
    B, S, D = x.shape
    hp = lax.Precision.HIGHEST
    wqkv = params["wqkv_q"].astype(jnp.float32) * params["gammas"][0]
    wout = params["wout_q"].astype(jnp.float32) * params["gammas"][1]
    qkv = jnp.einsum("bsd,fd->bsf", x, wqkv, precision=hp)
    qkv = qkv.reshape(B, S, 3, n_heads, d_head).transpose(2, 0, 3, 1, 4)
    q, k, v = qkv[0], qkv[1], qkv[2]                      # (B, H, S, dh)
    if use_rope:
        cos = params["cos_f32"][:S]
        sin = params["sin_f32"][:S]

        def rot(t):
            t1, t2 = t[..., :d_head // 2], t[..., d_head // 2:]
            return jnp.concatenate([-t2, t1], axis=-1)

        q = q * cos + rot(q) * sin
        k = k * cos + rot(k) * sin
    s = jnp.einsum("bhqd,bhkd->bhqk", q, k, precision=hp) * (d_head ** -0.5)
    a = jax.nn.softmax(s, axis=-1)
    o = jnp.einsum("bhqk,bhkd->bhqd", a, v, precision=hp)
    o = o.transpose(0, 2, 1, 3).reshape(B, S, D)
    return jnp.einsum("bsd,fd->bsf", o, wout, precision=hp)


# ----------------------------------- main -------------------------------------

if __name__ == "__main__":
    d_model, n_heads, d_head = 32, 4, 8
    B, S = 2, 8

    key = jax.random.PRNGKey(0)
    kx, kqkv, kout = jax.random.split(key, 3)
    x = jax.random.normal(kx, (B, S, d_model), dtype=jnp.float32)
    w_qkv = 0.5 * jax.random.normal(kqkv, (3 * d_model, d_model), dtype=jnp.float32)
    w_out = 0.5 * jax.random.normal(kout, (d_model, d_model), dtype=jnp.float32)

    params = prepare_mha_params(w_qkv, w_out, n_heads=n_heads, d_head=d_head,
                                max_seq_len=64)

    out = multi_head_attention(x, params, n_heads=n_heads, d_head=d_head,
                               use_rope=True)
    out = jax.block_until_ready(out)

    assert out.shape == (B, S, d_model)
    assert bool(jnp.all(jnp.isfinite(out)))

    ref = reference_forward(x, params, n_heads=n_heads, d_head=d_head,
                            use_rope=True)
    max_err = float(jnp.max(jnp.abs(out - ref)))
    ref_scale = float(jnp.max(jnp.abs(ref)))
    # The kernel intentionally runs the MXU with bf16 operands (+ approx
    # reciprocal in the softmax), so validate against the f32 HIGHEST-precision
    # reference with a bf16-appropriate max-norm relative bound.
    assert max_err <= 5e-2 * max(ref_scale, 1.0), (max_err, ref_scale)

    print("KERNEL_OK")
</pallas_src>

<mosaic_0001>
module attributes {stable_mosaic.version = 11 : i64} {
  func.func @_fused_mha_kernel(%arg0: i32, %arg1: memref<2xf32, #tpu.memory_space<smem>>, %arg2: memref<1x8x32xbf16, #tpu.memory_space<vmem>>, %arg3: memref<96x32xi8, #tpu.memory_space<vmem>>, %arg4: memref<32x32xi8, #tpu.memory_space<vmem>>, %arg5: memref<8x8xbf16, #tpu.memory_space<vmem>>, %arg6: memref<8x8xbf16, #tpu.memory_space<vmem>>, %arg7: memref<1x8x32xf32, #tpu.memory_space<vmem>>, %arg8: memref<8x32xf32, #tpu.memory_space<vmem>>) attributes {dimension_semantics = [#tpu.dimension_semantics<parallel>], iteration_bounds = array<i64: 2>, scalar_prefetch = 0 : i64, scratch_operands = 1 : i64, tpu.core_type = #tpu.core_type<tc>, window_params = [{transform_indices = @transform_0, window_bounds = array<i64: 2>}, {transform_indices = @transform_1, window_bounds = array<i64: 1, 8, 32>}, {pipeline_mode = #tpu.pipeline_mode<synchronous>, transform_indices = @transform_2, window_bounds = array<i64: 96, 32>}, {pipeline_mode = #tpu.pipeline_mode<synchronous>, transform_indices = @transform_3, window_bounds = array<i64: 32, 32>}, {pipeline_mode = #tpu.pipeline_mode<synchronous>, transform_indices = @transform_4, window_bounds = array<i64: 8, 8>}, {pipeline_mode = #tpu.pipeline_mode<synchronous>, transform_indices = @transform_5, window_bounds = array<i64: 8, 8>}, {transform_indices = @transform_6, window_bounds = array<i64: 1, 8, 32>}]} {
    %c0 = arith.constant 0 : index
    %c0_0 = arith.constant 0 : index
    %c0_1 = arith.constant 0 : index
    %0 = vector.load %arg2[%c0, %c0_0, %c0_1] : memref<1x8x32xbf16, #tpu.memory_space<vmem>>, vector<1x8x32xbf16>
    %1 = vector.shape_cast %0 : vector<1x8x32xbf16> to vector<8x32xbf16>
    %c0_2 = arith.constant 0 : index
    %c0_3 = arith.constant 0 : index
    %2 = vector.load %arg3[%c0_2, %c0_3] : memref<96x32xi8, #tpu.memory_space<vmem>>, vector<96x32xi8>
    %3 = arith.sitofp %2 : vector<96x32xi8> to vector<96x32xbf16>
    %c0_4 = arith.constant 0 : index
    %c0_5 = arith.constant 0 : index
    %4 = vector.load %arg4[%c0_4, %c0_5] : memref<32x32xi8, #tpu.memory_space<vmem>>, vector<32x32xi8>
    %5 = arith.sitofp %4 : vector<32x32xi8> to vector<32x32xbf16>
    %c0_6 = arith.constant 0 : index
    %c0_7 = arith.constant 0 : index
    %6 = vector.load %arg5[%c0_6, %c0_7] : memref<8x8xbf16, #tpu.memory_space<vmem>>, vector<8x8xbf16>
    %7 = arith.extf %6 : vector<8x8xbf16> to vector<8x8xf32>
    %c0_8 = arith.constant 0 : index
    %c0_9 = arith.constant 0 : index
    %8 = vector.load %arg6[%c0_8, %c0_9] : memref<8x8xbf16, #tpu.memory_space<vmem>>, vector<8x8xbf16>
    %9 = arith.extf %8 : vector<8x8xbf16> to vector<8x8xf32>
    %c0_10 = arith.constant 0 : index
    %10 = memref.load %arg1[%c0_10] : memref<2xf32, #tpu.memory_space<smem>>
    %c1 = arith.constant 1 : index
    %11 = memref.load %arg1[%c1] : memref<2xf32, #tpu.memory_space<smem>>
    %cst = arith.constant dense<0.000000e+00> : vector<8x96xf32>
    %12 = tpu.matmul %1, %3, %cst {dimension_numbers = #tpu.dot_dimension_numbers<[1], [1], [0], [0], [0, 0, 1, 0], [], []>} : vector<8x32xbf16>, vector<96x32xbf16>, vector<8x96xf32> -> vector<8x96xf32>
    %13 = vector.extract_strided_slice %12 {offsets = [0, 0], sizes = [8, 32], strides = [1, 1]} : vector<8x96xf32> to vector<8x32xf32>
    %14 = vector.broadcast %10 : f32 to vector<8x32xf32>
    %15 = arith.mulf %13, %14 : vector<8x32xf32>
    %16 = vector.extract_strided_slice %12 {offsets = [0, 32], sizes = [8, 32], strides = [1, 1]} : vector<8x96xf32> to vector<8x32xf32>
    %17 = vector.extract_strided_slice %12 {offsets = [0, 64], sizes = [8, 32], strides = [1, 1]} : vector<8x96xf32> to vector<8x32xf32>
    %18 = vector.extract_strided_slice %15 {offsets = [0, 0], sizes = [8, 8], strides = [1, 1]} : vector<8x32xf32> to vector<8x8xf32>
    %19 = vector.extract_strided_slice %18 {offsets = [0, 4], sizes = [8, 4], strides = [1, 1]} : vector<8x8xf32> to vector<8x4xf32>
    %20 = vector.extract_strided_slice %18 {offsets = [0, 0], sizes = [8, 4], strides = [1, 1]} : vector<8x8xf32> to vector<8x4xf32>
    %21 = tpu.concatenate %19, %20 in 1 : vector<8x4xf32>, vector<8x4xf32> -> vector<8x8xf32>
    %22 = arith.mulf %18, %7 : vector<8x8xf32>
    %23 = arith.mulf %21, %9 : vector<8x8xf32>
    %24 = arith.addf %22, %23 : vector<8x8xf32>
    %25 = arith.truncf %24 : vector<8x8xf32> to vector<8x8xbf16>
    %26 = vector.extract_strided_slice %16 {offsets = [0, 0], sizes = [8, 8], strides = [1, 1]} : vector<8x32xf32> to vector<8x8xf32>
    %27 = vector.extract_strided_slice %26 {offsets = [0, 4], sizes = [8, 4], strides = [1, 1]} : vector<8x8xf32> to vector<8x4xf32>
    %28 = vector.extract_strided_slice %26 {offsets = [0, 0], sizes = [8, 4], strides = [1, 1]} : vector<8x8xf32> to vector<8x4xf32>
    %29 = tpu.concatenate %27, %28 in 1 : vector<8x4xf32>, vector<8x4xf32> -> vector<8x8xf32>
    %30 = arith.mulf %26, %7 : vector<8x8xf32>
    %31 = arith.mulf %29, %9 : vector<8x8xf32>
    %32 = arith.addf %30, %31 : vector<8x8xf32>
    %33 = arith.truncf %32 : vector<8x8xf32> to vector<8x8xbf16>
    %34 = vector.extract_strided_slice %17 {offsets = [0, 0], sizes = [8, 8], strides = [1, 1]} : vector<8x32xf32> to vector<8x8xf32>
    %35 = arith.truncf %34 : vector<8x8xf32> to vector<8x8xbf16>
    %cst_11 = arith.constant dense<0.000000e+00> : vector<8x8xf32>
    %36 = tpu.matmul %25, %33, %cst_11 {dimension_numbers = #tpu.dot_dimension_numbers<[1], [1], [0], [0], [0, 0, 1, 0], [], []>} : vector<8x8xbf16>, vector<8x8xbf16>, vector<8x8xf32> -> vector<8x8xf32>
    %cst_12 = arith.constant dense<0xFF800000> : vector<8xf32>
    %37 = vector.multi_reduction <maximumf>, %36, %cst_12 [1] : vector<8x8xf32> to vector<8xf32>
    %38 = vector.shape_cast %37 : vector<8xf32> to vector<8x1xf32>
    %39 = vector.broadcast %38 : vector<8x1xf32> to vector<8x8xf32>
    %40 = arith.subf %36, %39 : vector<8x8xf32>
    %41 = math.exp %40 : vector<8x8xf32>
    %cst_13 = arith.constant dense<0.000000e+00> : vector<8xf32>
    %42 = vector.multi_reduction <add>, %41, %cst_13 [1] : vector<8x8xf32> to vector<8xf32>
    %43 = vector.shape_cast %42 : vector<8xf32> to vector<8x1xf32>
    %44 = tpu.reciprocal %43 {approx = true} : vector<8x1xf32> -> vector<8x1xf32>
    %45 = vector.broadcast %44 : vector<8x1xf32> to vector<8x8xf32>
    %46 = arith.mulf %41, %45 : vector<8x8xf32>
    %47 = arith.truncf %46 : vector<8x8xf32> to vector<8x8xbf16>
    %cst_14 = arith.constant dense<0.000000e+00> : vector<8x8xf32>
    %48 = tpu.matmul %47, %35, %cst_14 {dimension_numbers = #tpu.dot_dimension_numbers<[1], [0], [0], [1], [0, 0, 1, 1], [], []>} : vector<8x8xbf16>, vector<8x8xbf16>, vector<8x8xf32> -> vector<8x8xf32>
    %c0_15 = arith.constant 0 : index
    %c0_16 = arith.constant 0 : index
    %49 = vector.load %arg8[%c0_15, %c0_16] : memref<8x32xf32, #tpu.memory_space<vmem>>, vector<8x8xf32>
    tpu.vector_store %arg8[%c0_15, %c0_16], %48 {strides = array<i32>} : memref<8x32xf32, #tpu.memory_space<vmem>>, vector<8x8xf32>,
    %50 = vector.extract_strided_slice %15 {offsets = [0, 8], sizes = [8, 8], strides = [1, 1]} : vector<8x32xf32> to vector<8x8xf32>
    %51 = vector.extract_strided_slice %50 {offsets = [0, 4], sizes = [8, 4], strides = [1, 1]} : vector<8x8xf32> to vector<8x4xf32>
    %52 = vector.extract_strided_slice %50 {offsets = [0, 0], sizes = [8, 4], strides = [1, 1]} : vector<8x8xf32> to vector<8x4xf32>
    %53 = tpu.concatenate %51, %52 in 1 : vector<8x4xf32>, vector<8x4xf32> -> vector<8x8xf32>
    %54 = arith.mulf %50, %7 : vector<8x8xf32>
    %55 = arith.mulf %53, %9 : vector<8x8xf32>
    %56 = arith.addf %54, %55 : vector<8x8xf32>
    %57 = arith.truncf %56 : vector<8x8xf32> to vector<8x8xbf16>
    %58 = vector.extract_strided_slice %16 {offsets = [0, 8], sizes = [8, 8], strides = [1, 1]} : vector<8x32xf32> to vector<8x8xf32>
    %59 = vector.extract_strided_slice %58 {offsets = [0, 4], sizes = [8, 4], strides = [1, 1]} : vector<8x8xf32> to vector<8x4xf32>
    %60 = vector.extract_strided_slice %58 {offsets = [0, 0], sizes = [8, 4], strides = [1, 1]} : vector<8x8xf32> to vector<8x4xf32>
    %61 = tpu.concatenate %59, %60 in 1 : vector<8x4xf32>, vector<8x4xf32> -> vector<8x8xf32>
    %62 = arith.mulf %58, %7 : vector<8x8xf32>
    %63 = arith.mulf %61, %9 : vector<8x8xf32>
    %64 = arith.addf %62, %63 : vector<8x8xf32>
    %65 = arith.truncf %64 : vector<8x8xf32> to vector<8x8xbf16>
    %66 = vector.extract_strided_slice %17 {offsets = [0, 8], sizes = [8, 8], strides = [1, 1]} : vector<8x32xf32> to vector<8x8xf32>
    %67 = arith.truncf %66 : vector<8x8xf32> to vector<8x8xbf16>
    %cst_17 = arith.constant dense<0.000000e+00> : vector<8x8xf32>
    %68 = tpu.matmul %57, %65, %cst_17 {dimension_numbers = #tpu.dot_dimension_numbers<[1], [1], [0], [0], [0, 0, 1, 0], [], []>} : vector<8x8xbf16>, vector<8x8xbf16>, vector<8x8xf32> -> vector<8x8xf32>
    %cst_18 = arith.constant dense<0xFF800000> : vector<8xf32>
    %69 = vector.multi_reduction <maximumf>, %68, %cst_18 [1] : vector<8x8xf32> to vector<8xf32>
    %70 = vector.shape_cast %69 : vector<8xf32> to vector<8x1xf32>
    %71 = vector.broadcast %70 : vector<8x1xf32> to vector<8x8xf32>
    %72 = arith.subf %68, %71 : vector<8x8xf32>
    %73 = math.exp %72 : vector<8x8xf32>
    %cst_19 = arith.constant dense<0.000000e+00> : vector<8xf32>
    %74 = vector.multi_reduction <add>, %73, %cst_19 [1] : vector<8x8xf32> to vector<8xf32>
    %75 = vector.shape_cast %74 : vector<8xf32> to vector<8x1xf32>
    %76 = tpu.reciprocal %75 {approx = true} : vector<8x1xf32> -> vector<8x1xf32>
    %77 = vector.broadcast %76 : vector<8x1xf32> to vector<8x8xf32>
    %78 = arith.mulf %73, %77 : vector<8x8xf32>
    %79 = arith.truncf %78 : vector<8x8xf32> to vector<8x8xbf16>
    %cst_20 = arith.constant dense<0.000000e+00> : vector<8x8xf32>
    %80 = tpu.matmul %79, %67, %cst_20 {dimension_numbers = #tpu.dot_dimension_numbers<[1], [0], [0], [1], [0, 0, 1, 1], [], []>} : vector<8x8xbf16>, vector<8x8xbf16>, vector<8x8xf32> -> vector<8x8xf32>
    %c0_21 = arith.constant 0 : index
    %c8 = arith.constant 8 : index
    %81 = vector.load %arg8[%c0_21, %c8] : memref<8x32xf32, #tpu.memory_space<vmem>>, vector<8x8xf32>
    tpu.vector_store %arg8[%c0_21, %c8], %80 {strides = array<i32>} : memref<8x32xf32, #tpu.memory_space<vmem>>, vector<8x8xf32>,
    %82 = vector.extract_strided_slice %15 {offsets = [0, 16], sizes = [8, 8], strides = [1, 1]} : vector<8x32xf32> to vector<8x8xf32>
    %83 = vector.extract_strided_slice %82 {offsets = [0, 4], sizes = [8, 4], strides = [1, 1]} : vector<8x8xf32> to vector<8x4xf32>
    %84 = vector.extract_strided_slice %82 {offsets = [0, 0], sizes = [8, 4], strides = [1, 1]} : vector<8x8xf32> to vector<8x4xf32>
    %85 = tpu.concatenate %83, %84 in 1 : vector<8x4xf32>, vector<8x4xf32> -> vector<8x8xf32>
    %86 = arith.mulf %82, %7 : vector<8x8xf32>
    %87 = arith.mulf %85, %9 : vector<8x8xf32>
    %88 = arith.addf %86, %87 : vector<8x8xf32>
    %89 = arith.truncf %88 : vector<8x8xf32> to vector<8x8xbf16>
    %90 = vector.extract_strided_slice %16 {offsets = [0, 16], sizes = [8, 8], strides = [1, 1]} : vector<8x32xf32> to vector<8x8xf32>
    %91 = vector.extract_strided_slice %90 {offsets = [0, 4], sizes = [8, 4], strides = [1, 1]} : vector<8x8xf32> to vector<8x4xf32>
    %92 = vector.extract_strided_slice %90 {offsets = [0, 0], sizes = [8, 4], strides = [1, 1]} : vector<8x8xf32> to vector<8x4xf32>
    %93 = tpu.concatenate %91, %92 in 1 : vector<8x4xf32>, vector<8x4xf32> -> vector<8x8xf32>
    %94 = arith.mulf %90, %7 : vector<8x8xf32>
    %95 = arith.mulf %93, %9 : vector<8x8xf32>
    %96 = arith.addf %94, %95 : vector<8x8xf32>
    %97 = arith.truncf %96 : vector<8x8xf32> to vector<8x8xbf16>
    %98 = vector.extract_strided_slice %17 {offsets = [0, 16], sizes = [8, 8], strides = [1, 1]} : vector<8x32xf32> to vector<8x8xf32>
    %99 = arith.truncf %98 : vector<8x8xf32> to vector<8x8xbf16>
    %cst_22 = arith.constant dense<0.000000e+00> : vector<8x8xf32>
    %100 = tpu.matmul %89, %97, %cst_22 {dimension_numbers = #tpu.dot_dimension_numbers<[1], [1], [0], [0], [0, 0, 1, 0], [], []>} : vector<8x8xbf16>, vector<8x8xbf16>, vector<8x8xf32> -> vector<8x8xf32>
    %cst_23 = arith.constant dense<0xFF800000> : vector<8xf32>
    %101 = vector.multi_reduction <maximumf>, %100, %cst_23 [1] : vector<8x8xf32> to vector<8xf32>
    %102 = vector.shape_cast %101 : vector<8xf32> to vector<8x1xf32>
    %103 = vector.broadcast %102 : vector<8x1xf32> to vector<8x8xf32>
    %104 = arith.subf %100, %103 : vector<8x8xf32>
    %105 = math.exp %104 : vector<8x8xf32>
    %cst_24 = arith.constant dense<0.000000e+00> : vector<8xf32>
    %106 = vector.multi_reduction <add>, %105, %cst_24 [1] : vector<8x8xf32> to vector<8xf32>
    %107 = vector.shape_cast %106 : vector<8xf32> to vector<8x1xf32>
    %108 = tpu.reciprocal %107 {approx = true} : vector<8x1xf32> -> vector<8x1xf32>
    %109 = vector.broadcast %108 : vector<8x1xf32> to vector<8x8xf32>
    %110 = arith.mulf %105, %109 : vector<8x8xf32>
    %111 = arith.truncf %110 : vector<8x8xf32> to vector<8x8xbf16>
    %cst_25 = arith.constant dense<0.000000e+00> : vector<8x8xf32>
    %112 = tpu.matmul %111, %99, %cst_25 {dimension_numbers = #tpu.dot_dimension_numbers<[1], [0], [0], [1], [0, 0, 1, 1], [], []>} : vector<8x8xbf16>, vector<8x8xbf16>, vector<8x8xf32> -> vector<8x8xf32>
    %c0_26 = arith.constant 0 : index
    %c16 = arith.constant 16 : index
    %113 = vector.load %arg8[%c0_26, %c16] : memref<8x32xf32, #tpu.memory_space<vmem>>, vector<8x8xf32>
    tpu.vector_store %arg8[%c0_26, %c16], %112 {strides = array<i32>} : memref<8x32xf32, #tpu.memory_space<vmem>>, vector<8x8xf32>,
    %114 = vector.extract_strided_slice %15 {offsets = [0, 24], sizes = [8, 8], strides = [1, 1]} : vector<8x32xf32> to vector<8x8xf32>
    %115 = vector.extract_strided_slice %114 {offsets = [0, 4], sizes = [8, 4], strides = [1, 1]} : vector<8x8xf32> to vector<8x4xf32>
    %116 = vector.extract_strided_slice %114 {offsets = [0, 0], sizes = [8, 4], strides = [1, 1]} : vector<8x8xf32> to vector<8x4xf32>
    %117 = tpu.concatenate %115, %116 in 1 : vector<8x4xf32>, vector<8x4xf32> -> vector<8x8xf32>
    %118 = arith.mulf %114, %7 : vector<8x8xf32>
    %119 = arith.mulf %117, %9 : vector<8x8xf32>
    %120 = arith.addf %118, %119 : vector<8x8xf32>
    %121 = arith.truncf %120 : vector<8x8xf32> to vector<8x8xbf16>
    %122 = vector.extract_strided_slice %16 {offsets = [0, 24], sizes = [8, 8], strides = [1, 1]} : vector<8x32xf32> to vector<8x8xf32>
    %123 = vector.extract_strided_slice %122 {offsets = [0, 4], sizes = [8, 4], strides = [1, 1]} : vector<8x8xf32> to vector<8x4xf32>
    %124 = vector.extract_strided_slice %122 {offsets = [0, 0], sizes = [8, 4], strides = [1, 1]} : vector<8x8xf32> to vector<8x4xf32>
    %125 = tpu.concatenate %123, %124 in 1 : vector<8x4xf32>, vector<8x4xf32> -> vector<8x8xf32>
    %126 = arith.mulf %122, %7 : vector<8x8xf32>
    %127 = arith.mulf %125, %9 : vector<8x8xf32>
    %128 = arith.addf %126, %127 : vector<8x8xf32>
    %129 = arith.truncf %128 : vector<8x8xf32> to vector<8x8xbf16>
    %130 = vector.extract_strided_slice %17 {offsets = [0, 24], sizes = [8, 8], strides = [1, 1]} : vector<8x32xf32> to vector<8x8xf32>
    %131 = arith.truncf %130 : vector<8x8xf32> to vector<8x8xbf16>
    %cst_27 = arith.constant dense<0.000000e+00> : vector<8x8xf32>
    %132 = tpu.matmul %121, %129, %cst_27 {dimension_numbers = #tpu.dot_dimension_numbers<[1], [1], [0], [0], [0, 0, 1, 0], [], []>} : vector<8x8xbf16>, vector<8x8xbf16>, vector<8x8xf32> -> vector<8x8xf32>
    %cst_28 = arith.constant dense<0xFF800000> : vector<8xf32>
    %133 = vector.multi_reduction <maximumf>, %132, %cst_28 [1] : vector<8x8xf32> to vector<8xf32>
    %134 = vector.shape_cast %133 : vector<8xf32> to vector<8x1xf32>
    %135 = vector.broadcast %134 : vector<8x1xf32> to vector<8x8xf32>
    %136 = arith.subf %132, %135 : vector<8x8xf32>
    %137 = math.exp %136 : vector<8x8xf32>
    %cst_29 = arith.constant dense<0.000000e+00> : vector<8xf32>
    %138 = vector.multi_reduction <add>, %137, %cst_29 [1] : vector<8x8xf32> to vector<8xf32>
    %139 = vector.shape_cast %138 : vector<8xf32> to vector<8x1xf32>
    %140 = tpu.reciprocal %139 {approx = true} : vector<8x1xf32> -> vector<8x1xf32>
    %141 = vector.broadcast %140 : vector<8x1xf32> to vector<8x8xf32>
    %142 = arith.mulf %137, %141 : vector<8x8xf32>
    %143 = arith.truncf %142 : vector<8x8xf32> to vector<8x8xbf16>
    %cst_30 = arith.constant dense<0.000000e+00> : vector<8x8xf32>
    %144 = tpu.matmul %143, %131, %cst_30 {dimension_numbers = #tpu.dot_dimension_numbers<[1], [0], [0], [1], [0, 0, 1, 1], [], []>} : vector<8x8xbf16>, vector<8x8xbf16>, vector<8x8xf32> -> vector<8x8xf32>
    %c0_31 = arith.constant 0 : index
    %c24 = arith.constant 24 : index
    %145 = vector.load %arg8[%c0_31, %c24] : memref<8x32xf32, #tpu.memory_space<vmem>>, vector<8x8xf32>
    tpu.vector_store %arg8[%c0_31, %c24], %144 {strides = array<i32>} : memref<8x32xf32, #tpu.memory_space<vmem>>, vector<8x8xf32>,
    %c0_32 = arith.constant 0 : index
    %c0_33 = arith.constant 0 : index
    %146 = vector.load %arg8[%c0_32, %c0_33] : memref<8x32xf32, #tpu.memory_space<vmem>>, vector<8x32xf32>
    %147 = arith.truncf %146 : vector<8x32xf32> to vector<8x32xbf16>
    %cst_34 = arith.constant dense<0.000000e+00> : vector<8x32xf32>
    %148 = tpu.matmul %147, %5, %cst_34 {dimension_numbers = #tpu.dot_dimension_numbers<[1], [1], [0], [0], [0, 0, 1, 0], [], []>} : vector<8x32xbf16>, vector<32x32xbf16>, vector<8x32xf32> -> vector<8x32xf32>
    %149 = vector.broadcast %11 : f32 to vector<8x32xf32>
    %150 = arith.mulf %148, %149 : vector<8x32xf32>
    %c0_35 = arith.constant 0 : index
    %c0_36 = arith.constant 0 : index
    %c0_37 = arith.constant 0 : index
    %151 = vector.load %arg7[%c0_35, %c0_36, %c0_37] : memref<1x8x32xf32, #tpu.memory_space<vmem>>, vector<1x8x32xf32>
    %152 = vector.shape_cast %151 : vector<1x8x32xf32> to vector<8x32xf32>
    %153 = vector.shape_cast %150 : vector<8x32xf32> to vector<1x8x32xf32>
    tpu.vector_store %arg7[%c0_35, %c0_36, %c0_37], %153 {strides = array<i32>} : memref<1x8x32xf32, #tpu.memory_space<vmem>>, vector<1x8x32xf32>,
    return
  }
  func.func @transform_0(%arg0: i32) -> i32 {
    %c0_i32 = arith.constant 0 : i32
    %c0_i32_0 = arith.constant 0 : i32
    return %c0_i32 : i32
  }
  func.func @transform_1(%arg0: i32) -> (i32, i32, i32) {
    %c0_i32 = arith.constant 0 : i32
    %c0_i32_0 = arith.constant 0 : i32
    %c0_i32_1 = arith.constant 0 : i32
    return %arg0, %c0_i32, %c0_i32_0 : i32, i32, i32
  }
  func.func @transform_2(%arg0: i32) -> (i32, i32) {
    %c0_i32 = arith.constant 0 : i32
    %c0_i32_0 = arith.constant 0 : i32
    %c0_i32_1 = arith.constant 0 : i32
    return %c0_i32, %c0_i32_0 : i32, i32
  }
  func.func @transform_3(%arg0: i32) -> (i32, i32) {
    %c0_i32 = arith.constant 0 : i32
    %c0_i32_0 = arith.constant 0 : i32
    %c0_i32_1 = arith.constant 0 : i32
    return %c0_i32, %c0_i32_0 : i32, i32
  }
  func.func @transform_4(%arg0: i32) -> (i32, i32) {
    %c0_i32 = arith.constant 0 : i32
    %c0_i32_0 = arith.constant 0 : i32
    %c0_i32_1 = arith.constant 0 : i32
    return %c0_i32, %c0_i32_0 : i32, i32
  }
  func.func @transform_5(%arg0: i32) -> (i32, i32) {
    %c0_i32 = arith.constant 0 : i32
    %c0_i32_0 = arith.constant 0 : i32
    %c0_i32_1 = arith.constant 0 : i32
    return %c0_i32, %c0_i32_0 : i32, i32
  }
  func.func @transform_6(%arg0: i32) -> (i32, i32, i32) {
    %c0_i32 = arith.constant 0 : i32
    %c0_i32_0 = arith.constant 0 : i32
    %c0_i32_1 = arith.constant 0 : i32
    return %arg0, %c0_i32, %c0_i32_0 : i32, i32, i32
  }
}

</mosaic_0001>

<bundles_post_ra>
// kernel: tpu_custom_call.1
= control target key start
LH: loop header
LB: loop body
LE: loop exit
PB: predicated region body
PF: predicated region fallthrough
CT: control target
= control target key end

     0   :  { %11 = vsyncpa [#allocation5], 0  ;;  %s1739_s0 = inlined_call_operand.vmem [shape: f32[2], index: 0, kind: input, shape index: {}]   ;;  %s1740_s1 = inlined_call_operand.vmem [shape: bf16[2,8,32], index: 1, kind: input, shape index: {}]   ;;  %s1741_s2 = inlined_call_operand.vmem [shape: s8[96,32], index: 2, kind: input, shape index: {}]   ;;  %s1742_s3 = inlined_call_operand.vmem [shape: s8[32,32], index: 3, kind: input, shape index: {}]   ;;  %s1743_s4 = inlined_call_operand.vmem [shape: bf16[8,8], index: 4, kind: input, shape index: {}]   ;;  %s1744_s5 = inlined_call_operand.vmem [shape: bf16[8,8], index: 5, kind: input, shape index: {}]   ;;  %s1745_s6 = inlined_call_operand.hbm [shape: f32[2,8,32], index: 6, kind: output, shape index: {}]  }
   0x1   :  { %12 = vsyncpa [#allocation4], 0 }
   0x2   :  { %14 = vsyncpa [#allocation4 + $0x1], 0  ;;  %s1432_s21 = smov 0   ;;  %s1434_s22 = smov 0  }
   0x3   :  { %s1436_s23 = smov 0   ;;  %s1438_s24 = smov 0  }
   0x4 LB: > { %s1453_s25 = sadd.s32 4294967295, %s1367_s24   ;;  %s1075_s26 = sadd.s32 4294967294, %s1367_s24   ;;  %s1367_s24 = sphi %s1438_s24, %s1752_s24   ;;  %s1363_s23 = sphi %s1436_s23, %s1751_s23   ;;  %s1359_s22 = sphi %s1434_s22, %s1750_s22   ;;  %s1355_s21 = sphi %s1432_s21, %s1749_s21  }
   0x5   : > { %s1457_s27 = sadd.s32 1, %s1367_s24   ;;  %s158_s28 = sadd.s32 1, %s1363_s23 }
   0x6   : > { %s155_s29 = ssub.s32 %s1367_s24, %s1457_s27  ;;  %p168_p0 = scmp.ne.s32.totalorder %s1363_s23, %s1359_s22 }
   0x7   : > { %p156_p1 = scmp.eq.s32.totalorder %s155_s29, 0  ;;  %p169_p2 = scmp.eq.s32.totalorder %s1453_s25, 1 }
   0x8   : > { %p174_p3 = scmp.ne.s32.totalorder %s1359_s22, %s1355_s21  ;;  %p175_p4 = scmp.eq.s32.totalorder %s1075_s26, 1 }
   0x9   : > { %s1468_s30 = scalar_select %p156_p1, %s1363_s23, %s158_s28  }
   0xa   : > { %p1470_p5 = por %p169_p2, %p168_p0  ;;  %p1474_p6 = por %p175_p4, %p174_p3 }
   0xb   : > { %p1076_p7 = scmp.ge.s32.totalorder %s1367_s24, 1  ;;  %p182_p8 = scmp.lt.s32.totalorder %s1367_s24, 3 }
   0xc   : > { %p1210_p9 = scmp.eq.s32.totalorder %s1453_s25, 0  ;;  %s195_s12 = sshll.u32 %s1739_s0, 4  ;;  %s196_s12 = int_to_ptr.vmem [resolvable:$true] %s195_s12 }
   0xd   : > { %p1481_p10 = pnand %p1076_p7, %p182_p8  ;;  %s1288_s13 = scalar_lea.vmem %s196_s12, 16 }
   0xe   : > { %p1289_p13 = scmp.ne.s32.totalorder %s196_s12, %s1288_s13  ;;  %p1296_p3 = scmp.lt.s32.totalorder %s196_s12, %s196_s12 }
   0xf   : > { %p1202_p11 = pneg %p1481_p10  ;;  %p1297_p4 = scmp.lt.s32.totalorder %s1288_s13, %s1288_s13 }
  0x11   : > { %p1203_p12 = pnand %p1210_p9, %p1202_p11  ;;  %p1298_p7 = por %p1297_p4, %p1296_p3 }
  0x13   : > { %p1290_p0 = pneg %p1203_p12 }
  0x15   : > { %p1291_p1 = pnand %p1290_p0, %p1289_p13 }
  0x17   : > { %p1292_p2 = pneg %p1291_p1 }
  0x19   : > { %p1299_p8 = pnand %p1298_p7, %p1292_p2 }
  0x1b   : > { %1302 = shalt.err (!%p1299_p8)
}
  0x1c   : > { %s1369_s14 = smov [#allocation3]   ;;  %227 = sbr.rel (%p1481_p10) target bundleno = 3226 (0xc9a), region = 44 }
  0x1d   : > { %1205 = dma.vmem_to_smem (!%p1203_p12), %s196_s12, 16, %s1369_s14, [#allocation5]  }
  0x21   : > { %1346 = dma.done.wait (%p1210_p9), [#allocation5], 16  }
  0x22   : > { %1348 = vsyncadd (%p1210_p9), [#allocation5], 4294967280 }
  0x23   : > { %233 = sfence }
  0x24   : > { %v265_v0 = vld [vmem:[%s1741_s2 + $0x10] sm:$0xff]  ;;  %vm281_vm0 = vcmask 261120   ;;  %v1370_v1 = vmov 0.0   ;;  %vm1371_vm1 = vmmov 0   ;;  %v275_v3 = vld [vmem:[%s1743_s4] sm:$0xf] }
  0x25   : > { %1124 = vmatprep.subr.bf16.mxu0 %v1370_v1  ;;  %v271_v2 = vunpack.c.h.s8.bf16 %v265_v0  ;;  %1136 = vmatprep.mubr.msk.bf16.mxu0 %vm1371_vm1, %v1370_v1  ;;  %v1507_v4 = vunpack.c.l.bf16 %v275_v3  ;;  %s1372_s19 = smov 32   ;;  %v270_v6 = vunpack.c.l.s8.bf16 %v265_v0  ;;  %v264_v8 = vld [vmem:[%s1741_s2 + $0x8] sm:$0xff]  ;;  %v263_v13 = vld [vmem:[%s1741_s2] sm:$0xff]  ;;  %p257_p9 = scmp.lt.s32.totalorder %s1453_s25, 1  ;;  %vm352_vm2 = vcmask 31744  }
  0x26   : > { %1140 = vmatprep.subr.bf16.mxu1 %v1370_v1  ;;  %1142 = vmatprep.mubr.msk.bf16.mxu1 %vm1371_vm1, %v1370_v1  ;;  %v269_v9 = vunpack.c.h.s8.bf16 %v264_v8  ;;  %v268_v11 = vunpack.c.l.s8.bf16 %v264_v8  ;;  %v267_v14 = vunpack.c.h.s8.bf16 %v263_v13  ;;  %v266_v16 = vunpack.c.l.s8.bf16 %v263_v13  ;;  %s1373_s14 = smov 92   ;;  %s1374_s15 = smov 100   ;;  %v277_v23 = vld [vmem:[%s1744_s5] sm:$0xf] }
  0x27   : > { %v301_v5 = vsel %vm281_vm0, %v271_v2, 0  ;;  %367 = vrot.lane.b32.xlu1 %v1507_v4, %s1372_s19  ;;  %v298_v7 = vsel %vm281_vm0, %v270_v6, 0  ;;  %s258_s9 = scalar_select %p257_p9, %s1453_s25, 1  ;;  %v1548_v25 = vunpack.c.l.bf16 %v277_v23  ;;  %vm382_vm3 = vcmask 64512  }
  0x28   : > { %1125 = vmatpush3.bf16.xpose.msra.mxu0 %v301_v5  ;;  %v295_v10 = vsel %vm281_vm0, %v269_v9, 0  ;;  %v292_v12 = vsel %vm281_vm0, %v268_v11, 0  ;;  %v289_v15 = vsel %vm281_vm0, %v267_v14, 0  ;;  %v286_v17 = vsel %vm281_vm0, %v266_v16, 0  ;;  %s279_s16 = sld [smem:[#allocation3]]  ;;  %s1375_s20 = smov 124  }
  0x29   : > { %1126 = vmatprep.subr.bf16.mxu0 %v1370_v1  ;;  %s1082_s10 = sshll.u32 %s258_s9, 2  ;;  %s1376_s26 = smov 84   ;;  %vm447_vm4 = vcmask 1043456   ;;  %vm638_vm5 = vcmask 130112   ;;  %vm786_vm6 = vcmask 195712   ;;  %vm934_vm7 = vcmask 261312  }
  0x2a   : > { %s260_s13 = scalar_lea.vmem %s1740_s1, %s1082_s10  ;;  %s1377_s28 = smov 116  }
  0x2b   : > { %v262_v18 = vld [vmem:[%s260_s13] sm:$0xf]  ;;  %s1378_s29 = smov 40   ;;  %s1380_s9 = smov 4  }
  0x2c   : > { %s1381_s10 = smov 8   ;;  %s1382_s11 = smov 64  }
  0x2d   : > { %s1383_s12 = smov 88   ;;  %s1384_s13 = smov 76  }
  0x2e   : > { %v343_v29 = vstv %s279_s16  ;;  %s1386_s16 = smov 108   ;;  %s1387_s17 = smov 48  }
  0x2f   : > { %s1388_s18 = smov 16  }
  0x30   : > { %1127 = vmatpush3.bf16.xpose.msra.mxu0 %v298_v7 }
  0x31   : > { %1128 = vmatprep.subr.bf16.mxu0 %v1370_v1 }
  0x38   : > { %1129 = vmatpush3.bf16.xpose.msra.mxu0 %v295_v10 }
  0x39   : > { %1130 = vmatprep.subr.bf16.mxu0 %v1370_v1 }
  0x40   : > { %1131 = vmatpush3.bf16.xpose.msra.mxu0 %v292_v12 }
  0x41   : > { %1132 = vmatprep.subr.bf16.mxu0 %v1370_v1 }
  0x48   : > { %1133 = vmatpush3.bf16.xpose.msra.mxu0 %v289_v15 }
  0x49   : > { %1134 = vmatprep.subr.bf16.mxu0 %v1370_v1 }
  0x50   : > { %1135 = vmatpush3.bf16.xpose.msra.mxu0 %v286_v17 }
  0x51   : > { %1188 = vmatprep.subr.bf16.mxu0 %v1370_v1 }
  0x57   : > { %1137 = vmatmul.mubr.msk.bf16.vlgmr.msra.gmra.mxu0 %vm281_vm0, %v262_v18 }
  0x58   : > { %1192 = vmatprep.mubr.msk.bf16.mxu0 %vm1371_vm1, %v1370_v1 }
  0x99   : > { %v368_v31 = vpop.permute.xlu1 %367 }
 0x117   : > { %v1540_v19 = vpop.f32.mrf.mxu0 }
 0x118   : > { %359 = vrot.lane.b32.xlu0 %v1540_v19, %s1373_s14  ;;  %v1554_v30 = vmul.f32 %v343_v29, %v1540_v19  ;;  %v370_v32 = vmul.f32 %v368_v31, %v1540_v19  ;;  %v1590_v60 = vpack.c.bf16 %v1540_v19, %v1540_v19  ;;  %s1385_s14 = smov 120  }
 0x119   : > { %v1138_v20 = vpop.f32.mrf.mxu0 }
 0x11a   : > { %v354_v47 = vmul.f32 %v1554_v30, %v1507_v4 }
 0x11b   : > { %v340_v21 = vpop.f32.mrf.mxu0 }
 0x11c   : > { %362 = vrot.lane.b32.xlu0 %v1540_v19, %s1374_s15 }
 0x11d   : > { %v1139_v22 = vpop.f32.mrf.mxu0 }
 0x18a   : > { %v360_v24 = vpop.permute.xlu0 %359 }
 0x18e   : > { %v363_v26 = vpop.permute.xlu0 %362 }
 0x18f   : > { %v365_v27 = vsel %vm352_vm2, %v360_v24, %v363_v26 }
 0x190   : > { %v371_v28 = vmul.f32 %v365_v27, %v1548_v25 }
 0x192   : > { %373 = vrot.lane.b32.xlu1 %v371_v28, %s1372_s19  ;;  %s1379_s19 = smov 96  }
 0x196   : > { %346 = vrot.lane.b32.xlu1 %v1554_v30, %s1375_s20  ;;  %s1389_s20 = smov 56  }
 0x19a   : > { %507 = vrot.lane.b32.xlu1 %v1540_v19, %s1376_s26  ;;  %s1390_s26 = smov 112  }
 0x19e   : > { %492 = vrot.lane.b32.xlu1 %v1554_v30, %s1377_s28  ;;  %s1391_s28 = smov 68  }
 0x1a2   : > { %511 = vrot.lane.b32.xlu1 %v1507_v4, %s1378_s29 }
 0x204   : > { %v374_v33 = vpop.permute.xlu1 %373 }
 0x205   : > { %v376_v34 = vadd.f32 %v374_v33, %v370_v32 }
 0x207   : > { %v377_v35 = vpack.c.bf16 %v376_v34, %v376_v34 }
 0x208   : > { %v347_v36 = vpop.permute.xlu1 %346 }
 0x209   : > { %380 = vrot.lane.b32.xlu0 %v377_v35, %s1379_s19  ;;  %s1392_s19 = smov 80  }
 0x20c   : > { %v1562_v37 = vpop.permute.xlu1 %507 }
 0x20d   : > { %v510_v38 = vsel %vm352_vm2, %v1562_v37, %v360_v24  ;;  %349 = vrot.lane.b32.xlu0 %v1554_v30, %s1380_s9  ;;  %s1393_s9 = smov 24  }
 0x20e   : > { %v515_v39 = vmul.f32 %v510_v38, %v1548_v25 }
 0x210   : > { %517 = vrot.lane.b32.xlu1 %v515_v39, %s1378_s29  ;;  %v1569_v40 = vpop.permute.xlu1 %492 }
 0x211   : > { %v495_v41 = vsel %vm352_vm2, %v1569_v40, %v347_v36 }
 0x212   : > { %v500_v42 = vmul.f32 %v495_v41, %v1548_v25 }
 0x214   : > { %496 = vrot.lane.b32.xlu1 %v1507_v4, %s1381_s10  ;;  %v512_v56 = vpop.permute.xlu1 %511 }
 0x215   : > { %v514_v58 = vmul.f32 %v512_v56, %v1540_v19 }
 0x218   : > { %502 = vrot.lane.b32.xlu1 %v500_v42, %s1381_s10 }
 0x27b   : > { %v381_v43 = vpop.permute.xlu0 %380 }
 0x27c   : > { %v387_v44 = vsel %vm382_vm3, %v381_v43, 0 }
 0x27d   : > { %1141 = vmatpush3.bf16.xpose.msra.mxu1 %v387_v44 }
 0x27e   : > { %1146 = vmatprep.subr.bf16.mxu1 %v1370_v1 }
 0x27f   : > { %v350_v45 = vpop.permute.xlu0 %349 }
 0x280   : > { %v353_v46 = vsel %vm352_vm2, %v347_v36, %v350_v45 }
 0x281   : > { %v355_v48 = vmul.f32 %v353_v46, %v1548_v25 }
 0x282   : > { %v518_v57 = vpop.permute.xlu1 %517 }
 0x283   : > { %v356_v49 = vadd.f32 %v355_v48, %v354_v47  ;;  %v520_v59 = vadd.f32 %v518_v57, %v514_v58 }
 0x285   : > { %v357_v50 = vpack.c.bf16 %v356_v49, %v356_v49  ;;  %v521_v61 = vpack.c.bf16 %v520_v59, %v520_v59 }
 0x286   : > { %v497_v7 = vpop.permute.xlu1 %496 }
 0x287   : > { %1143 = vmatmul.mubr.msk.bf16.vlgmr.msra.gmra.mxu1 %vm382_vm3, %v357_v50  ;;  %v499_v9 = vmul.f32 %v497_v7, %v1554_v30 }
 0x288   : > { %1148 = vmatprep.mubr.msk.bf16.mxu1 %vm1371_vm1, %v1370_v1 }
 0x28a   : > { %v503_v8 = vpop.permute.xlu1 %502 }
 0x28b   : > { %v505_v10 = vadd.f32 %v503_v8, %v499_v9 }
 0x28d   : > { %v506_v11 = vpack.c.bf16 %v505_v10, %v505_v10 }
 0x347   : > { %v423_v51 = vpop.f32.mrf.mxu1 }
 0x348   : > { %v429_v52 = vsel %vm382_vm3, %v423_v51, -inf }
 0x349   : > { %430 = vmax.xlane.f32.xlu0 %v429_v52  ;;  %v1144_v53 = vpop.f32.mrf.mxu1 }
 0x34b   : > { %v426_v54 = vpop.f32.mrf.mxu1 }
 0x34d   : > { %v1145_v55 = vpop.f32.mrf.mxu1 }
 0x35f   : > { %442 = vrot.lane.b32.xlu0 %v1590_v60, %s1382_s11  ;;  %s1395_s11 = smov 104  }
 0x363   : > { %526 = vrot.lane.b32.xlu0 %v521_v61, %s1383_s12  ;;  %s254_s12 = sand.u32 1, %s1359_s22  }
 0x367   : > { %655 = vrot.lane.b32.xlu0 %v1540_v19, %s1384_s13  ;;  %s1083_s13 = sld [smem:[#allocation3 + $0x1]] }
 0x3d2   : > { %v431_v62 = vpop.xlane.xlu0 %430 }
 0x3d3   : > { %v432_v63 = vsub.f32 %v423_v51, %v431_v62 }
 0x3d5   : > { %v433_v0 = vmul.f32 1.442695, %v432_v63 }
 0x3d6   : > { %v443_v2 = vpop.permute.xlu0 %442 }
 0x3d7   : > { %1272 = vpow2.f32 %v433_v0  ;;  %v449_v3 = vsel %vm447_vm4, %v443_v2, 0 }
 0x3d8   : > { %1147 = vmatpush3.bf16.msra.mxu1 %v449_v3 }
 0x3d9   : > { %1152 = vmatprep.subr.bf16.mxu1 %v1370_v1 }
 0x3da   : > { %v527_v12 = vpop.permute.xlu0 %526 }
 0x3db   : > { %v532_v31 = vsel %vm382_vm3, %v527_v12, 0 }
 0x3de   : > { %v1598_v13 = vpop.permute.xlu0 %655 }
 0x3df   : > { %v658_v14 = vsel %vm352_vm2, %v1598_v13, %v1562_v37 }
 0x3e0   : > { %v663_v15 = vmul.f32 %v658_v14, %v1548_v25 }
 0x3e4   : > { %v1273_v5 = vpop.eup %1272 }
 0x3e5   : > { %v435_v6 = vsel %vm382_vm3, %v1273_v5, 0.0 }
 0x3e6   : > { %436 = vadd.xlane.f32.xlu1 %v435_v6 }
 0x3f7   : > { %523 = vrot.lane.b32.xlu1 %v506_v11, %s1385_s14  ;;  %s1081_s14 = sshll.u32 %s254_s12, 3 }
 0x3fb   : > { %640 = vrot.lane.b32.xlu1 %v1554_v30, %s1386_s16  ;;  %s1095_s16 = sshll.u32 %s1453_s25, 7 }
 0x3ff   : > { %659 = vrot.lane.b32.xlu1 %v1507_v4, %s1387_s17 }
 0x403   : > { %665 = vrot.lane.b32.xlu1 %v663_v15, %s1387_s17 }
 0x407   : > { %644 = vrot.lane.b32.xlu1 %v1507_v4, %s1388_s18 }
 0x46f   : > { %v437_v16 = vpop.xlane.xlu1 %436 }
 0x470   : > { %1274 = vrcp.f32 %v437_v16 }
 0x473   : > { %v524_v17 = vpop.permute.xlu1 %523 }
 0x477   : > { %v1610_v18 = vpop.permute.xlu1 %640 }
 0x478   : > { %v643_v20 = vsel %vm352_vm2, %v1610_v18, %v1569_v40 }
 0x479   : > { %v648_v21 = vmul.f32 %v643_v20, %v1548_v25 }
 0x47b   : > { %v660_v22 = vpop.permute.xlu1 %659  ;;  %650 = vrot.lane.b32.xlu1 %v648_v21, %s1388_s18 }
 0x47c   : > { %v662_v24 = vmul.f32 %v660_v22, %v1540_v19 }
 0x47d   : > { %v1275_v23 = vpop.eup %1274 }
 0x47e   : > { %v439_v26 = vmul.f32 %v1275_v23, %v1273_v5 }
 0x47f   : > { %586 = vrot.lane.b32.xlu1 %v1590_v60, %s1389_s20  ;;  %v666_v27 = vpop.permute.xlu1 %665 }
 0x480   : > { %v668_v28 = vadd.f32 %v666_v27, %v662_v24  ;;  %v440_v29 = vpack.c.bf16 %v439_v26, %v439_v26 }
 0x482   : > { %1149 = vmatmul.mubr.msk.bf16.vlgmr.msra.gmra.mxu1 %vm382_vm3, %v440_v29  ;;  %v669_v53 = vpack.c.bf16 %v668_v28, %v668_v28 }
 0x483   : > { %1153 = vmatpush3.bf16.xpose.msra.mxu1 %v532_v31  ;;  %1154 = vmatprep.mubr.msk.bf16.mxu1 %vm1371_vm1, %v1370_v1  ;;  %v645_v32 = vpop.permute.xlu1 %644 }
 0x484   : > { %1158 = vmatprep.subr.bf16.mxu1 %v1370_v1  ;;  %v647_v33 = vmul.f32 %v645_v32, %v1554_v30 }
 0x48a   : > { %1155 = vmatmul.mubr.msk.bf16.vlgmr.msra.gmra.mxu1 %vm382_vm3, %v524_v17 }
 0x48b   : > { %1160 = vmatprep.mubr.msk.bf16.mxu1 %vm1371_vm1, %v1370_v1 }
 0x4ed   : > { %v651_v34 = vpop.permute.xlu1 %650 }
 0x4ee   : > { %v653_v35 = vadd.f32 %v651_v34, %v647_v33 }
 0x4f0   : > { %v654_v36 = vpack.c.bf16 %v653_v35, %v653_v35 }
 0x4f1   : > { %v587_v37 = vpop.permute.xlu1 %586 }
 0x4f2   : > { %v592_v38 = vsel %vm447_vm4, %v587_v37, 0  ;;  %671 = vrot.lane.b32.xlu1 %v654_v36, %s1390_s26 }
 0x4f3   : > { %1159 = vmatpush3.bf16.msra.mxu1 %v592_v38 }
 0x4f4   : > { %1164 = vmatprep.subr.bf16.mxu1 %v1370_v1 }
 0x4f6   : > { %803 = vrot.lane.b32.xlu1 %v1540_v19, %s1391_s28  ;;  %s1697_s28 = scalar_lea.hbm %s1745_s6, %s1095_s16 }
 0x542   : > { %v485_v39 = vpop.f32.mrf.mxu1 }
 0x543   : > { %491 = vst.msk [vmem:[#allocation2] sm:$0xff] %vm382_vm3, %v485_v39 }
 0x544   : > { %v1150_v40 = vpop.f32.mrf.mxu1 }
 0x546   : > { %v488_v41 = vpop.f32.mrf.mxu1 }
 0x548   : > { %v1151_v42 = vpop.f32.mrf.mxu1 }
 0x54a   : > { %v568_v43 = vpop.f32.mrf.mxu1 }
 0x54b   : > { %v574_v44 = vsel %vm382_vm3, %v568_v43, -inf }
 0x54c   : > { %575 = vmax.xlane.f32.xlu0 %v574_v44  ;;  %v1156_v45 = vpop.f32.mrf.mxu1 }
 0x54e   : > { %v571_v46 = vpop.f32.mrf.mxu1 }
 0x550   : > { %v1157_v47 = vpop.f32.mrf.mxu1 }
 0x564   : > { %v672_v54 = vpop.permute.xlu1 %671 }
 0x568   : > { %v804_v55 = vpop.permute.xlu1 %803 }
 0x569   : > { %v806_v56 = vsel %vm352_vm2, %v804_v55, %v1598_v13 }
 0x56a   : > { %v811_v57 = vmul.f32 %v806_v56, %v1548_v25 }
 0x5d5   : > { %v576_v48 = vpop.xlane.xlu0 %575 }
 0x5d6   : > { %v577_v49 = vsub.f32 %v568_v43, %v576_v48 }
 0x5d8   : > { %v578_v50 = vmul.f32 1.442695, %v577_v49 }
 0x5da   : > { %1276 = vpow2.f32 %v578_v50 }
 0x5e7   : > { %v1277_v51 = vpop.eup %1276 }
 0x5e8   : > { %v580_v52 = vsel %vm382_vm3, %v1277_v51, 0.0 }
 0x5e9   : > { %581 = vadd.xlane.f32.xlu0 %v580_v52 }
 0x5ff   : > { %674 = vrot.lane.b32.xlu0 %v669_v53, %s1392_s19  ;;  %s991_s19 = scalar_lea.sflag [#allocation4], %s254_s12 }
 0x603   : > { %788 = vrot.lane.b32.xlu0 %v1554_v30, %s1374_s15  ;;  %s1394_s15 = smov 72  }
 0x607   : > { %807 = vrot.lane.b32.xlu0 %v1507_v4, %s1389_s20 }
 0x60b   : > { %813 = vrot.lane.b32.xlu0 %v811_v57, %s1389_s20 }
 0x60f   : > { %792 = vrot.lane.b32.xlu0 %v1507_v4, %s1393_s9 }
 0x672   : > { %v582_v58 = vpop.xlane.xlu0 %581 }
 0x673   : > { %1278 = vrcp.f32 %v582_v58 }
 0x676   : > { %v675_v59 = vpop.permute.xlu0 %674 }
 0x677   : > { %v680_v5 = vsel %vm382_vm3, %v675_v59, 0  ;;  %v272_v59 = vld [vmem:[%s1742_s3] sm:$0xff] }
 0x67a   : > { %v789_v61 = vpop.permute.xlu0 %788 }
 0x67b   : > { %v791_v62 = vsel %vm352_vm2, %v789_v61, %v1610_v18  ;;  %v274_v61 = vunpack.c.h.s8.bf16 %v272_v59 }
 0x67c   : > { %v796_v63 = vmul.f32 %v791_v62, %v1548_v25 }
 0x67d   : > { %v945_v62 = vsel %vm281_vm0, %v274_v61, 0 }
 0x67e   : > { %798 = vrot.lane.b32.xlu0 %v796_v63, %s1393_s9  ;;  %v808_v10 = vpop.permute.xlu0 %807  ;;  %1189 = vmatpush3.bf16.xpose.msra.mxu0 %v945_v62  ;;  %v273_v63 = vunpack.c.l.s8.bf16 %v272_v59 }
 0x67f   : > { %v810_v16 = vmul.f32 %v808_v10, %v1540_v19  ;;  %1190 = vmatprep.subr.bf16.mxu0 %v1370_v1 }
 0x680   : > { %v1279_v0 = vpop.eup %1278 }
 0x681   : > { %v584_v2 = vmul.f32 %v1279_v0, %v1277_v51  ;;  %v942_v0 = vsel %vm281_vm0, %v273_v63, 0 }
 0x682   : > { %v814_v14 = vpop.permute.xlu0 %813 }
 0x683   : > { %v585_v3 = vpack.c.bf16 %v584_v2, %v584_v2  ;;  %v816_v17 = vadd.f32 %v814_v14, %v810_v16 }
 0x685   : > { %1161 = vmatmul.mubr.msk.bf16.vlgmr.msra.gmra.mxu1 %vm382_vm3, %v585_v3  ;;  %v817_v21 = vpack.c.bf16 %v816_v17, %v816_v17 }
 0x686   : > { %1165 = vmatpush3.bf16.xpose.msra.mxu1 %v680_v5  ;;  %1166 = vmatprep.mubr.msk.bf16.mxu1 %vm1371_vm1, %v1370_v1  ;;  %v793_v15 = vpop.permute.xlu0 %792 }
 0x687   : > { %1170 = vmatprep.subr.bf16.mxu1 %v1370_v1  ;;  %v795_v20 = vmul.f32 %v793_v15, %v1554_v30  ;;  %1191 = vmatpush3.bf16.xpose.msra.mxu0 %v942_v0 }
 0x68d   : > { %1167 = vmatmul.mubr.msk.bf16.vlgmr.msra.gmra.mxu1 %vm382_vm3, %v672_v54 }
 0x68e   : > { %1172 = vmatprep.mubr.msk.bf16.mxu1 %vm1371_vm1, %v1370_v1 }
 0x6f0   : > { %v799_v18 = vpop.permute.xlu0 %798 }
 0x6f1   : > { %v801_v22 = vadd.f32 %v799_v18, %v795_v20 }
 0x6f3   : > { %v802_v23 = vpack.c.bf16 %v801_v22, %v801_v22 }
 0x745   : > { %v1657_v4 = vpop.f32.mrf.mxu1 }
 0x747   : > { %v1162_v25 = vpop.f32.mrf.mxu1 }
 0x749   : > { %v631_v6 = vpop.f32.mrf.mxu1 }
 0x74b   : > { %v1163_v7 = vpop.f32.mrf.mxu1 }
 0x74d   : > { %v716_v8 = vpop.f32.mrf.mxu1 }
 0x74e   : > { %v722_v9 = vsel %vm382_vm3, %v716_v8, -inf }
 0x74f   : > { %723 = vmax.xlane.f32.xlu1 %v722_v9  ;;  %v1168_v11 = vpop.f32.mrf.mxu1 }
 0x751   : > { %v719_v12 = vpop.f32.mrf.mxu1 }
 0x753   : > { %v1169_v13 = vpop.f32.mrf.mxu1 }
 0x760   : > { %734 = vrot.lane.b32.xlu1 %v1590_v60, %s1387_s17  ;;  %s256_s17 = scalar_lea.vmem [#allocation6], %s1081_s14 }
 0x764   : > { %822 = vrot.lane.b32.xlu1 %v817_v21, %s1394_s15 }
 0x768   : > { %819 = vrot.lane.b32.xlu1 %v802_v23, %s1395_s11 }
 0x7d8   : > { %v724_v24 = vpop.xlane.xlu1 %723 }
 0x7d9   : > { %v725_v26 = vsub.f32 %v716_v8, %v724_v24 }
 0x7db   : > { %v726_v27 = vmul.f32 1.442695, %v725_v26 }
 0x7dc   : > { %v735_v28 = vpop.permute.xlu1 %734 }
 0x7dd   : > { %1280 = vpow2.f32 %v726_v27  ;;  %v740_v19 = vsel %vm447_vm4, %v735_v28, 0 }
 0x7de   : > { %1171 = vmatpush3.bf16.msra.mxu1 %v740_v19 }
 0x7df   : > { %1176 = vmatprep.subr.bf16.mxu1 %v1370_v1 }
 0x7e0   : > { %v823_v34 = vpop.permute.xlu1 %822 }
 0x7e1   : > { %v828_v36 = vsel %vm382_vm3, %v823_v34, 0 }
 0x7e4   : > { %v820_v37 = vpop.permute.xlu1 %819 }
 0x7ea   : > { %v1281_v30 = vpop.eup %1280 }
 0x7eb   : > { %v728_v29 = vsel %vm382_vm3, %v1281_v30, 0.0 }
 0x7ec   : > { %729 = vadd.xlane.f32.xlu0 %v728_v29 }
 0x875   : > { %v730_v31 = vpop.xlane.xlu0 %729 }
 0x876   : > { %1282 = vrcp.f32 %v730_v31 }
 0x883   : > { %v1283_v32 = vpop.eup %1282 }
 0x884   : > { %v732_v33 = vmul.f32 %v1283_v32, %v1281_v30 }
 0x886   : > { %v733_v35 = vpack.c.bf16 %v732_v33, %v732_v33 }
 0x888   : > { %1173 = vmatmul.mubr.msk.bf16.vlgmr.msra.gmra.mxu1 %vm382_vm3, %v733_v35 }
 0x889   : > { %1177 = vmatpush3.bf16.xpose.msra.mxu1 %v828_v36  ;;  %1178 = vmatprep.mubr.msk.bf16.mxu1 %vm1371_vm1, %v1370_v1 }
 0x88a   : > { %1182 = vmatprep.subr.bf16.mxu1 %v1370_v1 }
 0x890   : > { %1179 = vmatmul.mubr.msk.bf16.vlgmr.msra.gmra.mxu1 %vm382_vm3, %v820_v37 }
 0x891   : > { %1184 = vmatprep.mubr.msk.bf16.mxu1 %vm1371_vm1, %v1370_v1  ;;  %v987_v1 = vstv %s1083_s13 }
 0x948   : > { %v776_v38 = vpop.f32.mrf.mxu1 }
 0x94a   : > { %v1174_v39 = vpop.f32.mrf.mxu1 }
 0x94c   : > { %v779_v40 = vpop.f32.mrf.mxu1 }
 0x94e   : > { %v1175_v41 = vpop.f32.mrf.mxu1 }
 0x950   : > { %v864_v42 = vpop.f32.mrf.mxu1 }
 0x951   : > { %v870_v43 = vsel %vm382_vm3, %v864_v42, -inf }
 0x952   : > { %871 = vmax.xlane.f32.xlu1 %v870_v43  ;;  %v1180_v44 = vpop.f32.mrf.mxu1 }
 0x954   : > { %v867_v45 = vpop.f32.mrf.mxu1 }
 0x956   : > { %v1181_v46 = vpop.f32.mrf.mxu1 }
 0x9db   : > { %v872_v47 = vpop.xlane.xlu1 %871 }
 0x9dc   : > { %v873_v48 = vsub.f32 %v864_v42, %v872_v47 }
 0x9de   : > { %v874_v49 = vmul.f32 1.442695, %v873_v48 }
 0x9e0   : > { %1284 = vpow2.f32 %v874_v49 }
 0x9ed   : > { %v1285_v50 = vpop.eup %1284 }
 0x9ee   : > { %v876_v51 = vsel %vm382_vm3, %v1285_v50, 0.0 }
 0x9ef   : > { %877 = vadd.xlane.f32.xlu0 %v876_v51 }
 0xa05   : > { %882 = vrot.lane.b32.xlu0 %v1590_v60, %s1378_s29 }
 0xa09   : > { %635 = vrot.lane.b32.xlu0 %v1657_v4, %s1381_s10 }
 0xa0d   : > { %783 = vrot.lane.b32.xlu0 %v776_v38, %s1388_s18  ;;  %s1004_s18 = sshll.u32 %s256_s17, 4  ;;  %s1699_s18 = int_to_ptr.vmem [resolvable:$true] %s1004_s18 }
 0xa0e   : > { %s1303_s25 = scalar_lea.vmem %s1699_s18, 128 }
 0xa0f   : > { %p1304_p10 = scmp.ne.s32.totalorder %s1699_s18, %s1303_s25 }
 0xa11   : > { %p1305_p11 = pnand %p1304_p10, %p1470_p5 }
 0xa13   : > { %p1306_p12 = pneg %p1305_p11 }
 0xa78   : > { %v878_v52 = vpop.xlane.xlu0 %877 }
 0xa79   : > { %1286 = vrcp.f32 %v878_v52 }
 0xa7c   : > { %v883_v53 = vpop.permute.xlu0 %882 }
 0xa7d   : > { %v888_v54 = vsel %vm447_vm4, %v883_v53, 0 }
 0xa7e   : > { %1183 = vmatpush3.bf16.msra.mxu1 %v888_v54 }
 0xa80   : > { %v636_v55 = vpop.permute.xlu0 %635 }
 0xa81   : > { %639 = vst.msk [vmem:[#allocation2] sm:$0xff] %vm638_vm5, %v636_v55 }
 0xa84   : > { %v784_v56 = vpop.permute.xlu0 %783 }
 0xa85   : > { %787 = vst.msk [vmem:[#allocation2] sm:$0xff] %vm786_vm6, %v784_v56 }
 0xa86   : > { %v1287_v57 = vpop.eup %1286 }
 0xa87   : > { %v880_v58 = vmul.f32 %v1287_v57, %v1285_v50 }
 0xa89   : > { %v881_v60 = vpack.c.bf16 %v880_v58, %v880_v58 }
 0xa8b   : > { %1185 = vmatmul.mubr.msk.bf16.vlgmr.msra.gmra.mxu1 %vm382_vm3, %v881_v60 }
 0xb4b   : > { %v924_v2 = vpop.f32.mrf.mxu1 }
 0xb4c   : > { %931 = vrot.lane.b32.xlu1 %v924_v2, %s1393_s9  ;;  %s1396_s9 = smov [#allocation6]  }
 0xb4d   : > { %v1186_v3 = vpop.f32.mrf.mxu1  ;;  %s1307_s15 = sshll.u32 %s1396_s9, 4  ;;  %s1308_s15 = int_to_ptr.vmem [resolvable:$false] %s1307_s15 }
 0xb4e   : > { %s1309_s11 = scalar_lea.vmem %s1308_s15, 256  ;;  %p1310_p13 = scmp.lt.s32.totalorder %s1699_s18, %s1308_s15 }
 0xb4f   : > { %v927_v5 = vpop.f32.mrf.mxu1  ;;  %p1311_p0 = scmp.lt.s32.totalorder %s1309_s11, %s1303_s25 }
 0xb51   : > { %v1187_v4 = vpop.f32.mrf.mxu1  ;;  %p1312_p1 = por %p1311_p0, %p1310_p13 }
 0xb53   : > { %p1313_p2 = pnand %p1312_p1, %p1306_p12 }
 0xbbe   : > { %v932_v25 = vpop.permute.xlu1 %931 }
 0xbbf   : > { %935 = vst.msk [vmem:[#allocation2] sm:$0xff] %vm934_vm7, %v932_v25 }
 0xbc6   : > { %v936_v6 = vld [vmem:[#allocation2] sm:$0xff] }
 0xbc7   : > { %v937_v7 = vpack.c.bf16 %v936_v6, %v936_v6 }
 0xbc9   : > { %1193 = vmatmul.mubr.msk.bf16.vlgmr.msra.gmra.mxu0 %vm281_vm0, %v937_v7 }
 0xc89   : > { %v981_v8 = vpop.f32.mrf.mxu0 }
 0xc8a   : > { %v988_v9 = vmul.f32 %v987_v1, %v981_v8 }
 0xc8b   : > { %v1194_v10 = vpop.f32.mrf.mxu0 }
 0xc8c   : > { %989 = vst.msk [vmem:[%s256_s17] sm:$0xff] %vm281_vm0, %v988_v9 }
 0xc8d   : > { %v984_v11 = vpop.f32.mrf.mxu0 }
 0xc8e   : > { %1316 = shalt.err (!%p1313_p2)
}
 0xc8f   : > { %s1317_s29 = scalar_lea.hbm %s1697_s28, 128  ;;  %s1321_s13 = scalar_lea.hbm %s1745_s6, 256 }
 0xc90   : > { %p1318_p3 = scmp.ne.s32.totalorder %s1697_s28, %s1317_s29  ;;  %p1322_p8 = scmp.lt.s32.totalorder %s1697_s28, %s1745_s6 }
 0xc91   : > { %p1323_p9 = scmp.lt.s32.totalorder %s1321_s13, %s1317_s29 }
 0xc92   : > { %p1319_p4 = pnand %p1318_p3, %p1470_p5 }
 0xc93   : > { %p1324_p10 = por %p1323_p9, %p1322_p8 }
 0xc94   : > { %p1320_p7 = pneg %p1319_p4 }
 0xc96   : > { %p1325_p11 = pnand %p1324_p10, %p1320_p7 }
 0xc98   : > { %1328 = shalt.err (!%p1325_p11)
}
 0xc99   : > { %1200 = dma.vmem_to_hbm [thread:$0]  (%p1470_p5), %s1699_s18, 128, %s1697_s28, %s991_s19   ;;  %v1195_v12 = vpop.f32.mrf.mxu0 }
 0xc9a PF: > { %p1212_p12 = scmp.ge.s32.totalorder %s1367_s24, 2  ;;  %s1016_s17 = sand.u32 1, %s1355_s21  }
 0xc9b   : > { %s1017_s20 = scalar_lea.sflag [#allocation4], %s1016_s17 }
 0xc9c   : > { %p1207_p13 = pnand %p1212_p12, %p1474_p6 }
 0xc9e   : > { %p1208_p0 = pneg %p1207_p13 }
 0xca0   : > { %1350 = dma.done.wait (%p1208_p0), %s1017_s20, 128  }
 0xca1   : > { %1352 = vsyncadd (%p1208_p0), %s1017_s20, 4294967168  ;;  %p17_p1 = scmp.ge.s32.totalorder %s1457_s27, 4   ;;  %s1749_s21 = smov %s1359_s22 }
 0xca2   : > { %s1750_s22 = smov %s1363_s23  ;;  %s1751_s23 = smov %s1468_s30 }
 0xca3   : > { %s1752_s24 = smov %s1457_s27  ;;  %19 = sbr.rel (!%p17_p1) target bundleno = 4 (0x4), region = 84 }
 0xca8   :  { %1022 = vsyncpa [#allocation4], 1 }
 0xca9   :  { %1024 = vsyncpa [#allocation4 + $0x1], 1 }
 0xcaa   :  { %1025 = vsyncpa [#allocation5], 1 }
 0xcab   :  { %1027 = vsyncpa [#allocation5 + $0x1], 1 }

</bundles_post_ra>
